<compile_context>
chip_gen: v7x
topology: tpu7x:2x2x1
jax: 0.10.0
libtpu: 0.0.40
codegen_flags: <defaults>
</compile_context>

<pallas_src>
import functools

import jax
import jax.numpy as jnp
from jax.experimental import pallas as pl
from jax.experimental.pallas import tpu as pltpu


def _channel_attention_kernel(x_ref, w_ref, b_ref, o_ref, *, inv_hw):
    # x_ref: (rows, HW_pad)   w_ref: (rows, rows) block-diag kron(I_Bt, W)
    # b_ref: (rows, 1)        o_ref: (rows, HW_pad)      rows = Bt * C
    x = x_ref[...]
    # Global average pool over the (zero-padded) spatial lanes; divide by true HW.
    pooled = jnp.sum(x.astype(jnp.float32), axis=-1, keepdims=True) * inv_hw  # (rows, 1)
    # 1x1 conv over channels for all Bt batch rows at once (block-diagonal weight).
    # Result stays in sublane ("column") layout -> no relayout before broadcasting.
    y = jnp.dot(w_ref[...].astype(jnp.float32), pooled,
                preferred_element_type=jnp.float32)                           # (rows, 1)
    gate = jax.nn.sigmoid(y + b_ref[...].astype(jnp.float32))                 # (rows, 1)
    # Broadcast the per-(batch, channel) gate over the HW lanes and scale x.
    o_ref[...] = (x * gate.astype(x.dtype)).astype(o_ref.dtype)


def _choose_bt(B, C, hw_pad, x_itemsize, w_itemsize, vmem_budget_bytes=24 << 20):
    """Largest divisor Bt of B whose per-step working set fits the VMEM budget.

    Working set ~= double-buffered x input block + double-buffered output block
    + the block-diagonal gate weight.  Only Bt with Bt*C a multiple of 8 (or
    Bt == B, i.e. the block spans the full row axis) are legal block row-dims.
    """
    def cost(d):
        rows = d * C
        return 4 * rows * hw_pad * x_itemsize + 2 * rows * rows * w_itemsize

    divisors = [d for d in range(1, B + 1) if B % d == 0]
    legal = [d for d in divisors if (d * C) % 8 == 0 or d == B]
    fitting = [d for d in legal if cost(d) <= vmem_budget_bytes]
    return max(fitting) if fitting else min(legal)


@jax.jit
def channel_attention(x, weight, bias):
    """x: (B, C, H, W). weight: (C, C). bias: (C,). Returns (B, C, H, W)."""
    B, C, H, W = x.shape
    HW = H * W
    HW_pad = ((HW + 127) // 128) * 128          # lane-dense blocks (multiple of 128)
    x_itemsize = jnp.dtype(x.dtype).itemsize
    w_itemsize = jnp.dtype(weight.dtype).itemsize

    # Fold batch into the sublane axis: (B*C, HW), zero-pad the spatial lanes.
    x_flat = x.reshape(B * C, HW)
    if HW_pad != HW:
        x_flat = jnp.pad(x_flat, ((0, 0), (0, HW_pad - HW)))

    Bt = _choose_bt(B, C, HW_pad, x_itemsize, w_itemsize)
    rows = Bt * C
    grid = (B // Bt,)

    # Block-diagonal weight / tiled bias so the gate for all Bt rows is one matvec
    # in column (sublane) layout — no in-kernel reshapes or relayouts.
    w_bd = jnp.kron(jnp.eye(Bt, dtype=weight.dtype), weight)   # (rows, rows)
    b_col = jnp.tile(bias.reshape(C, 1), (Bt, 1))              # (rows, 1)

    kernel = functools.partial(_channel_attention_kernel, inv_hw=1.0 / HW)

    out_flat = pl.pallas_call(
        kernel,
        out_shape=jax.ShapeDtypeStruct((B * C, HW_pad), x.dtype),
        grid_spec=pltpu.PrefetchScalarGridSpec(
            num_scalar_prefetch=0,
            grid=grid,
            in_specs=[
                pl.BlockSpec((rows, HW_pad), lambda i: (i, 0)),
                pl.BlockSpec((rows, rows), lambda i: (0, 0)),
                pl.BlockSpec((rows, 1), lambda i: (0, 0)),
            ],
            out_specs=pl.BlockSpec((rows, HW_pad), lambda i: (i, 0)),
        ),
        compiler_params=pltpu.CompilerParams(
            dimension_semantics=("parallel",),        # batch-tile axis: megacore-shardable
            vmem_limit_bytes=48 * 1024 * 1024,        # > default scoped limit, < v7x physical
        ),
        cost_estimate=pl.CostEstimate(
            flops=2 * B * C * HW + 2 * B * C * C,
            transcendentals=B * C,
            bytes_accessed=2 * B * C * HW_pad * x_itemsize
            + (B // Bt) * rows * rows * w_itemsize,
        ),
    )(x_flat, w_bd, b_col)

    return out_flat[:, :HW].reshape(B, C, H, W)


def channel_attention_ref(x, weight, bias):
    pooled = jnp.mean(x, axis=(2, 3))                 # (B, C)
    y = pooled @ weight.T + bias                      # (B, C)
    gate = jax.nn.sigmoid(y)[:, :, None, None]        # (B, C, 1, 1)
    return x * gate


if __name__ == "__main__":
    B, C, H, W = 2, 4, 16, 16

    key = jax.random.PRNGKey(0)
    kx, kw, kb = jax.random.split(key, 3)

    x = jax.random.normal(kx, (B, C, H, W), dtype=jnp.float32)
    # Deterministic synthetic parameters for the 1x1 conv (Conv2d(C, C, 1, bias=True)).
    weight = jax.random.normal(kw, (C, C), dtype=jnp.float32) * 0.1
    bias = jax.random.normal(kb, (C,), dtype=jnp.float32) * 0.1

    out = channel_attention(x, weight, bias)
    out = jax.block_until_ready(out)

    ref = channel_attention_ref(x, weight, bias)
    assert out.shape == (B, C, H, W)
    assert jnp.allclose(out, ref, atol=1e-5, rtol=1e-5), "mismatch vs reference"

    print("KERNEL_OK")
</pallas_src>

<mosaic_0001>
module attributes {stable_mosaic.version = 11 : i64} {
  func.func @_channel_attention_kernel(%arg0: i32, %arg1: memref<8x256xf32, #tpu.memory_space<vmem>>, %arg2: memref<8x8xf32, #tpu.memory_space<vmem>>, %arg3: memref<8x1xf32, #tpu.memory_space<vmem>>, %arg4: memref<8x256xf32, #tpu.memory_space<vmem>>) attributes {dimension_semantics = [#tpu.dimension_semantics<parallel>], iteration_bounds = array<i64: 1>, scalar_prefetch = 0 : i64, scratch_operands = 0 : i64, tpu.core_type = #tpu.core_type<tc>, window_params = [{transform_indices = @transform_0, window_bounds = array<i64: 8, 256>}, {pipeline_mode = #tpu.pipeline_mode<synchronous>, transform_indices = @transform_1, window_bounds = array<i64: 8, 8>}, {pipeline_mode = #tpu.pipeline_mode<synchronous>, transform_indices = @transform_2, window_bounds = array<i64: 8, 1>}, {transform_indices = @transform_3, window_bounds = array<i64: 8, 256>}]} {
    %c0 = arith.constant 0 : index
    %c0_0 = arith.constant 0 : index
    %0 = vector.load %arg1[%c0, %c0_0] : memref<8x256xf32, #tpu.memory_space<vmem>>, vector<8x256xf32>
    %cst = arith.constant dense<0.000000e+00> : vector<8xf32>
    %1 = vector.multi_reduction <add>, %0, %cst [1] : vector<8x256xf32> to vector<8xf32>
    %2 = vector.shape_cast %1 : vector<8xf32> to vector<8x1xf32>
    %cst_1 = arith.constant 3.906250e-03 : f32
    %3 = vector.broadcast %cst_1 : f32 to vector<8x1xf32>
    %4 = arith.mulf %2, %3 : vector<8x1xf32>
    %c0_2 = arith.constant 0 : index
    %c0_3 = arith.constant 0 : index
    %5 = vector.load %arg2[%c0_2, %c0_3] : memref<8x8xf32, #tpu.memory_space<vmem>>, vector<8x8xf32>
    %cst_4 = arith.constant dense<0.000000e+00> : vector<8x1xf32>
    %6 = tpu.matmul %5, %4, %cst_4 {dimension_numbers = #tpu.dot_dimension_numbers<[1], [0], [0], [1], [0, 0, 1, 1], [], []>} : vector<8x8xf32>, vector<8x1xf32>, vector<8x1xf32> -> vector<8x1xf32>
    %c0_5 = arith.constant 0 : index
    %c0_6 = arith.constant 0 : index
    %7 = vector.load %arg3[%c0_5, %c0_6] : memref<8x1xf32, #tpu.memory_space<vmem>>, vector<8x1xf32>
    %8 = arith.addf %6, %7 : vector<8x1xf32>
    %9 = arith.negf %8 : vector<8x1xf32>
    %10 = math.exp %9 : vector<8x1xf32>
    %cst_7 = arith.constant 1.000000e+00 : f32
    %11 = vector.broadcast %cst_7 : f32 to vector<8x1xf32>
    %12 = arith.addf %11, %10 : vector<8x1xf32>
    %13 = arith.divf %11, %12 : vector<8x1xf32>
    %14 = vector.broadcast %13 : vector<8x1xf32> to vector<8x256xf32>
    %15 = arith.mulf %0, %14 : vector<8x256xf32>
    %c0_8 = arith.constant 0 : index
    %c0_9 = arith.constant 0 : index
    %16 = vector.load %arg4[%c0_8, %c0_9] : memref<8x256xf32, #tpu.memory_space<vmem>>, vector<8x256xf32>
    tpu.vector_store %arg4[%c0_8, %c0_9], %15 {strides = array<i32>} : memref<8x256xf32, #tpu.memory_space<vmem>>, vector<8x256xf32>,
    return
  }
  func.func @transform_0(%arg0: i32) -> (i32, i32) {
    %c0_i32 = arith.constant 0 : i32
    %c0_i32_0 = arith.constant 0 : i32
    return %arg0, %c0_i32 : i32, i32
  }
  func.func @transform_1(%arg0: i32) -> (i32, i32) {
    %c0_i32 = arith.constant 0 : i32
    %c0_i32_0 = arith.constant 0 : i32
    %c0_i32_1 = arith.constant 0 : i32
    return %c0_i32, %c0_i32_0 : i32, i32
  }
  func.func @transform_2(%arg0: i32) -> (i32, i32) {
    %c0_i32 = arith.constant 0 : i32
    %c0_i32_0 = arith.constant 0 : i32
    %c0_i32_1 = arith.constant 0 : i32
    return %c0_i32, %c0_i32_0 : i32, i32
  }
  func.func @transform_3(%arg0: i32) -> (i32, i32) {
    %c0_i32 = arith.constant 0 : i32
    %c0_i32_0 = arith.constant 0 : i32
    return %arg0, %c0_i32 : i32, i32
  }
}

</mosaic_0001>

<bundles_post_ra>
// kernel: channel_attention.1
= control target key start
LH: loop header
LB: loop body
LE: loop exit
PB: predicated region body
PF: predicated region fallthrough
CT: control target
= control target key end

     0   :  { %v132_v3 = vmov 0.0   ;;  %vm133_vm0 = vmmov 0   ;;  %vm22_vm1 = vcmask 64512   ;;  %v134_v7 = vmov 0   ;;  %s173_s0 = inlined_call_operand.vmem [shape: f32[8,256], index: 0, kind: input, shape index: {}]   ;;  %s174_s1 = inlined_call_operand.vmem [shape: f32[8,8], index: 1, kind: input, shape index: {}]   ;;  %s175_s2 = inlined_call_operand.vmem [shape: f32[8,1], index: 2, kind: input, shape index: {}]   ;;  %s176_s3 = inlined_call_operand.vmem [shape: f32[8,256], index: 3, kind: output, shape index: {}]  }
   0x1   :  { %v14_v0 = vld [vmem:[%s173_s0] sm:$0xff]  ;;  %v15_v1 = vld [vmem:[%s173_s0 + $0x8] sm:$0xff]  ;;  %119 = vmatprep.subr.mxu0 %v132_v3  ;;  %121 = vmatprep.mubr.msk.f32.mxu0 %vm133_vm0, %v132_v3 }
   0x2   :  { %v16_v2 = vadd.f32 %v15_v1, %v14_v0  ;;  %v20_v6 = vld [vmem:[%s174_s1] sm:$0xff]  ;;  %127 = vset.pattern.permute.xlu0 %v134_v7 }
   0x3   :  { %v21_v8 = vld [vmem:[%s175_s2] sm:$0xff] }
   0x4   :  { %17 = vadd.xlane.f32.xlu0 %v16_v2 }
  0x91   :  { %v18_v4 = vpop.xlane.xlu0 %17 }
  0x92   :  { %v19_v5 = vmul.f32 0.00390625, %v18_v4 }
  0x94   :  { %120 = vmatpush3.msra.mxu0 %v19_v5 }
  0x95   :  { %122 = vmatmul.mubr.msk.f32.vlgmr.msra.gmra.mrb[0].mxu0 %vm22_vm1, %v20_v6 }
 0x168   :  { %v92_v9 = vpop.f32.mrb[0].mxu0 }
 0x169   :  { %v93_v10 = vadd.f32 %v92_v9, %v21_v8  ;;  %v123_v11 = vpop.f32.mrb[1].mxu0 }
 0x16b   :  { %v116_v12 = vmul.f32 -1.442695, %v93_v10 }
 0x16d   :  { %128 = vpow2.f32 %v116_v12 }
 0x177   :  { %v129_v13 = vpop.eup %128 }
 0x178   :  { %v99_v14 = vadd.f32 1.0, %v129_v13 }
 0x17a   :  { %130 = vrcp.f32 %v99_v14 }
 0x184   :  { %v131_v15 = vpop.eup %130 }
 0x185   :  { %104 = vperm.xlu0 %127, %v131_v15  }
 0x204   :  { %v105_v16 = vpop.permute.xlu0 %104 }
 0x205   :  { %v107_v17 = vmul.f32 %v105_v16, %v14_v0  ;;  %v108_v18 = vmul.f32 %v105_v16, %v15_v1 }
 0x207   :  { %109 = vst [vmem:[%s176_s3] sm:$0xff] %v107_v17  ;;  %110 = vst [vmem:[%s176_s3 + $0x8] sm:$0xff] %v108_v18 }

</bundles_post_ra>
